<compile_context>
chip_gen: v7x
topology: tpu7x:2x2x1
jax: 0.10.0
libtpu: 0.0.40
codegen_flags: <defaults>
</compile_context>

<pallas_src>
import jax
import jax.numpy as jnp
from jax.experimental import pallas as pl
from jax.experimental.pallas import tpu as pltpu


def linear_sigmoid_kernel(x_ref, w_ref, b_ref, o_ref):
    # x_ref: (B, IN) f32, w_ref: (OUT, IN) torch layout, b_ref: (1, OUT), o_ref: (B, OUT)
    x = x_ref[...]            # (B, IN)
    w = w_ref[...]            # (OUT, IN)
    # Contraction over IN without the MXU: broadcast-multiply on the VPU,
    # 16-lane reduce on the XLU.  (B,1,IN) * (1,OUT,IN) -> (B,OUT,IN) -> (B,OUT)
    y = jnp.sum(x[:, None, :] * w[None, :, :], axis=-1)
    y = y + b_ref[...]        # bias broadcasts over B
    # Explicit sigmoid: exp lands on the EUP slot, reciprocal stays exact
    # (approx=False) to meet the 1e-5 check.
    o_ref[...] = pl.reciprocal(1.0 + jnp.exp(-y), approx=False).astype(o_ref.dtype)


def linear_sigmoid(x, weight, bias):
    """x: (B, IN) f32, weight: (OUT, IN) f32 (torch layout), bias: (OUT,) f32."""
    B, IN = x.shape
    OUT = weight.shape[0]
    # (OUT,) -> (1, OUT): metadata-only reshape, keeps the bias 2D for TPU
    # vreg layout friendliness.
    b2d = bias.reshape(1, OUT)

    vmem_spec = pl.BlockSpec(memory_space=pltpu.MemorySpace.VMEM)
    cost = pl.CostEstimate(
        flops=2 * B * IN * OUT,
        transcendentals=B * OUT,
        bytes_accessed=4 * (B * IN + OUT * IN + OUT + B * OUT),
    )
    return pl.pallas_call(
        linear_sigmoid_kernel,
        out_shape=jax.ShapeDtypeStruct((B, OUT), x.dtype),
        # No grid: single invocation, whole arrays resident in VMEM.
        in_specs=[vmem_spec, vmem_spec, vmem_spec],
        out_specs=vmem_spec,
        cost_estimate=cost,
    )(x, weight, b2d)


if __name__ == "__main__":
    key = jax.random.PRNGKey(0)
    kx, kw, kb = jax.random.split(key, 3)

    # Module shapes: Linear(16, 2); input x = (1, 16)
    B, IN, OUT = 1, 16, 2
    x = jax.random.normal(kx, (B, IN), dtype=jnp.float32)
    # Deterministic parameter init (mimic nn.Linear uniform range 1/sqrt(IN))
    bound = 1.0 / (IN ** 0.5)
    weight = jax.random.uniform(kw, (OUT, IN), dtype=jnp.float32,
                                minval=-bound, maxval=bound)
    bias = jax.random.uniform(kb, (OUT,), dtype=jnp.float32,
                              minval=-bound, maxval=bound)

    out = linear_sigmoid(x, weight, bias)
    out = jax.block_until_ready(out)

    # Reference check in plain JAX
    ref = jax.nn.sigmoid(x @ weight.T + bias)
    assert out.shape == (B, OUT)
    assert jnp.allclose(out, ref, atol=1e-5, rtol=1e-5)

    print("KERNEL_OK")
</pallas_src>

<mosaic_0001>
module attributes {stable_mosaic.version = 11 : i64} {
  func.func @linear_sigmoid_kernel(%arg0: memref<1x16xf32, #tpu.memory_space<vmem>>, %arg1: memref<2x16xf32, #tpu.memory_space<vmem>>, %arg2: memref<1x2xf32, #tpu.memory_space<vmem>>, %arg3: memref<1x2xf32, #tpu.memory_space<vmem>>) attributes {dimension_semantics = [], scalar_prefetch = 0 : i64, scratch_operands = 0 : i64, tpu.core_type = #tpu.core_type<tc>} {
    %c0 = arith.constant 0 : index
    %c0_0 = arith.constant 0 : index
    %0 = vector.load %arg0[%c0, %c0_0] : memref<1x16xf32, #tpu.memory_space<vmem>>, vector<1x16xf32>
    %c0_1 = arith.constant 0 : index
    %c0_2 = arith.constant 0 : index
    %1 = vector.load %arg1[%c0_1, %c0_2] : memref<2x16xf32, #tpu.memory_space<vmem>>, vector<2x16xf32>
    %2 = vector.shape_cast %0 : vector<1x16xf32> to vector<1x1x16xf32>
    %3 = vector.shape_cast %1 : vector<2x16xf32> to vector<1x2x16xf32>
    %4 = vector.broadcast %2 : vector<1x1x16xf32> to vector<1x2x16xf32>
    %5 = arith.mulf %4, %3 : vector<1x2x16xf32>
    %cst = arith.constant dense<0.000000e+00> : vector<1x2xf32>
    %6 = vector.multi_reduction <add>, %5, %cst [2] : vector<1x2x16xf32> to vector<1x2xf32>
    %c0_3 = arith.constant 0 : index
    %c0_4 = arith.constant 0 : index
    %7 = vector.load %arg2[%c0_3, %c0_4] : memref<1x2xf32, #tpu.memory_space<vmem>>, vector<1x2xf32>
    %8 = arith.addf %6, %7 : vector<1x2xf32>
    %cst_5 = arith.constant 0.000000e+00 : f32
    %9 = vector.broadcast %cst_5 : f32 to vector<1x2xf32>
    %10 = arith.subf %9, %8 : vector<1x2xf32>
    %11 = math.exp %10 : vector<1x2xf32>
    %cst_6 = arith.constant 1.000000e+00 : f32
    %12 = vector.broadcast %cst_6 : f32 to vector<1x2xf32>
    %13 = arith.addf %12, %11 : vector<1x2xf32>
    %14 = tpu.reciprocal %13 : vector<1x2xf32> -> vector<1x2xf32>
    %c0_7 = arith.constant 0 : index
    %c0_8 = arith.constant 0 : index
    %15 = vector.load %arg3[%c0_7, %c0_8] : memref<1x2xf32, #tpu.memory_space<vmem>>, vector<1x2xf32>
    tpu.vector_store %arg3[%c0_7, %c0_8], %14 {strides = array<i32>} : memref<1x2xf32, #tpu.memory_space<vmem>>, vector<1x2xf32>,
    return
  }
}

</mosaic_0001>

<bundles_post_ra>
// kernel: tpu_custom_call.1
= control target key start
LH: loop header
LB: loop body
LE: loop exit
PB: predicated region body
PF: predicated region fallthrough
CT: control target
= control target key end

     0   :  { %8 = vsyncpa [#allocation3], 0  ;;  %s196_s0 = inlined_call_operand.hbm [shape: f32[1,16], index: 0, kind: input, shape index: {}]   ;;  %s197_s1 = inlined_call_operand.vmem [shape: f32[2,16], index: 1, kind: input, shape index: {}]   ;;  %s198_s2 = inlined_call_operand.vmem [shape: f32[1,2], index: 2, kind: input, shape index: {}]   ;;  %s199_s3 = inlined_call_operand.hbm [shape: f32[1,2], index: 3, kind: output, shape index: {}]  }
   0x1   :  { %9 = vsyncpa [#allocation4], 0  ;;  %s143_s12 = smov [#allocation2]   ;;  %s95_s16 = scalar_lea.hbm %s196_s0, 16 }
   0x2   :  { %s16_s13 = sshll.u32 %s143_s12, 4  ;;  %p96_p0 = scmp.ne.s32.totalorder %s196_s0, %s95_s16  ;;  %s17_s13 = int_to_ptr.vmem [resolvable:$true] %s16_s13 }
   0x3   :  { %p99_p1 = scmp.lt.u32.totalorder %s95_s16, %s196_s0 }
   0x5   :  { %p101_p2 = pnand %p99_p1, %p96_p0 }
   0x7   :  { %104 = shalt.err (!%p101_p2)
}
   0x8   :  { %s105_s21 = scalar_lea.vmem %s17_s13, 16  ;;  %s109_s22 = scalar_lea.vmem %s17_s13, 32 }
   0x9   :  { %p106_p3 = scmp.ne.s32.totalorder %s17_s13, %s105_s21  ;;  %p110_p4 = scmp.lt.s32.totalorder %s17_s13, %s17_s13 }
   0xa   :  { %p111_p5 = scmp.lt.s32.totalorder %s109_s22, %s105_s21 }
   0xc   :  { %p112_p6 = por %p111_p5, %p110_p4 }
   0xe   :  { %p113_p7 = pnand %p112_p6, %p106_p3 }
  0x10   :  { %116 = shalt.err (!%p113_p7)
}
  0x11   :  { %19 = dma.hbm_to_vmem [thread:$0]  %s196_s0, 16, %s17_s13, [#allocation3]  }
  0x12   :  { %139 = dma.done.wait [#allocation3], 16  }
  0x13   :  { %140 = vsyncadd [#allocation3], 4294967280  ;;  %v84_v0 = vld [vmem:[#allocation2] ss:$0 sm:$0xff]  ;;  %v28_v1 = vld [vmem:[%s197_s1] sm:$0x3]  ;;  %v60_v14 = vlaneseq }
  0x14   :  { %vm36_vm0 = vcmask 123904   ;;  %v35_v2 = vmul.f32 %v84_v0, %v28_v1  ;;  %v85_v4 = vld [vmem:[%s198_s2] ss:$0 sm:$0xff]  ;;  %v144_v5 = vmov 0   ;;  %s145_s0 = smov [#allocation5]   ;;  %vm67_vm1 = vcmask 8192  }
  0x15   :  { %89 = vset.pattern.permute.xlu1 %v144_v5  ;;  %90 = vset.pattern.permute.xlu0 %v144_v5  ;;  %v61_v15 = vand.u32 127, %v60_v14  ;;  %v63_v16 = vshrl.u32 %v60_v14, 7  ;;  %s75_s1 = sshll.u32 %s145_s0, 4  ;;  %s76_s1 = int_to_ptr.vmem [resolvable:$true] %s75_s1 }
  0x16   :  { %v37_v3 = vsel %vm36_vm0, %v35_v2, 0.0  ;;  %s117_s2 = scalar_lea.vmem %s76_s1, 16  ;;  %s121_s29 = scalar_lea.vmem %s76_s1, 32 }
  0x17   :  { %38 = vadd.xlane.f32.xlu0 %v37_v3  ;;  %v64_v17 = vsub.s32 %v61_v15, %v63_v16  ;;  %p118_p8 = scmp.ne.s32.totalorder %s76_s1, %s117_s2  ;;  %p122_p9 = scmp.lt.s32.totalorder %s76_s1, %s76_s1 }
  0x18   :  { %p123_p10 = scmp.lt.s32.totalorder %s121_s29, %s117_s2 }
  0x1a   :  { %p124_p11 = por %p123_p10, %p122_p9 }
  0x1c   :  { %p125_p12 = pnand %p124_p11, %p118_p8 }
  0x2d   :  { %47 = vbcast.lane.b32.xlu0 %v85_v4, 256 }
  0xa4   :  { %v39_v6 = vpop.xlane.xlu0 %38 }
  0xa8   :  { %v48_v7 = vpop.permute.xlu0 %47 }
  0xa9   :  { %v50_v8 = vadd.f32 %v48_v7, %v39_v6 }
  0xab   :  { %v51_v9 = vsub.f32 0.0, %v50_v8 }
  0xad   :  { %v52_v10 = vmul.f32 1.442695, %v51_v9 }
  0xaf   :  { %91 = vpow2.f32 %v52_v10 }
  0xb9   :  { %v92_v11 = vpop.eup %91 }
  0xba   :  { %v54_v12 = vadd.f32 1.0, %v92_v11 }
  0xbc   :  { %93 = vrcp.f32 %v54_v12 }
  0xc6   :  { %v94_v13 = vpop.eup %93 }
  0xc7   :  { %58 = vperm.xlu1 %89, %v94_v13  }
 0x146   :  { %v59_v18 = vpop.permute.xlu1 %58 }
 0x147   :  { %v65_v19 = vrot.slane %v59_v18, %v64_v17 }
 0x149   :  { %68 = vst.msk [vmem:[#allocation5] sm:$0x1] %vm67_vm1, %v65_v19 }
 0x14a   :  { %128 = shalt.err (!%p125_p12)
}
 0x14b   :  { %s129_s5 = scalar_lea.hbm %s199_s3, 16 }
 0x14c   :  { %p130_p13 = scmp.ne.s32.totalorder %s199_s3, %s129_s5  ;;  %p133_p0 = scmp.lt.u32.totalorder %s129_s5, %s199_s3 }
 0x14e   :  { %p135_p1 = pnand %p133_p0, %p130_p13 }
 0x150   :  { %138 = shalt.err (!%p135_p1)
}
 0x151   :  { %78 = dma.vmem_to_hbm [thread:$0]  %s76_s1, 16, %s199_s3, [#allocation4]  }
 0x152   :  { %141 = dma.done.wait [#allocation4], 16  }
 0x153   :  { %142 = vsyncadd [#allocation4], 4294967280 }
 0x154   :  { %82 = vsyncpa [#allocation3], 1 }
 0x155   :  { %83 = vsyncpa [#allocation4], 1 }

</bundles_post_ra>
